<compile_context>
chip_gen: v7x
topology: tpu7x:2x2x1
jax: 0.10.0
libtpu: 0.0.40
codegen_flags: <defaults>
</compile_context>

<pallas_src>
import functools

import jax
import jax.numpy as jnp
from jax.experimental import pallas as pl
from jax.experimental.pallas import tpu as pltpu


def _ceil_to(x, m):
    return (x + m - 1) // m * m


def _vmem_tile_bytes(rows, cols, itemsize):
    # VMEM footprint of a 2-D tile: sublanes pad to 8, lanes pad to 128.
    return _ceil_to(max(rows, 1), 8) * _ceil_to(max(cols, 1), 128) * itemsize


def _conv_bn_relu_kernel(x_ref, w_ref, b_ref, o_ref, *, kh, band_ho, wo_p):
    """One (image, row-band) pair per grid step.

    x_ref: (1, 1, band_hi*Wo_p, kw*Cin)  bf16 W-unfolded, lane-packed input band (with halo rows)
    w_ref: (kh, kw*Cin, CPAD)            bf16 weights, BN scale folded in, Cout padded to CPAD
    b_ref: (1, CPAD)                     f32 folded BN bias
    o_ref: (1, 1, band_ho*Wo_p, CPAD)    f32 output band
    """
    m = band_ho * wo_p
    cpad = o_ref.shape[-1]
    acc = jnp.zeros((m, cpad), jnp.float32)
    # kh is tiny (3/5/7); the static offsets i*Wo_p are multiples of 8, so each slice is an
    # aligned sublane window (no relayout), and only one (kw*Cin, CPAD) weight slice is live
    # per iteration.
    for i in range(kh):
        a_i = x_ref[0, 0, pl.ds(i * wo_p, m), :]                      # (m, kw*Cin) bf16
        acc = acc + jnp.dot(a_i, w_ref[i], preferred_element_type=jnp.float32)
    y = acc + b_ref[...]                                              # folded BN bias
    o_ref[0, 0] = jnp.maximum(y, 0.0).astype(o_ref.dtype)


@functools.partial(jax.jit, static_argnames=("padding",))
def basic_conv2d(x_nchw, weight_oihw, gamma, beta, running_mean, running_var,
                 padding=1):
    eps = 0.001
    cout, cin, kh, kw = weight_oihw.shape
    n, _, h, w = x_nchw.shape
    hp, wp = h + 2 * padding, w + 2 * padding
    ho, wo = hp - kh + 1, wp - kw + 1

    cpad = _ceil_to(cout, 128)            # lane-dense output channels
    wo_p = _ceil_to(wo, 8)                # sublane-aligned output width
    kwcin = kw * cin

    # --- row-band sizing: target ~512 output rows of M per step, keep f32 out tile small ---
    target_m = 512
    band_ho = max(1, min(ho, target_m // wo_p))
    max_out_tile_bytes = 8 * 1024 * 1024  # cap a single (pre-double-buffer) f32 out tile
    while band_ho > 1 and band_ho * wo_p * cpad * 4 > max_out_tile_bytes:
        band_ho -= 1
    n_bands = -(-ho // band_ho)
    band_hi = band_ho + kh - 1            # halo rows covering the kh kernel rows

    # --- wrapper-side layout glue (XLA) ---
    # NCHW -> NHWC, zero-pad: `padding` on top/left, padding + alignment slack on bottom/right.
    pad_h_extra = n_bands * band_ho - ho
    pad_w_extra = wo_p - wo
    x_nhwc = jnp.transpose(x_nchw, (0, 2, 3, 1))
    x_pad = jnp.pad(
        x_nhwc,
        ((0, 0), (padding, padding + pad_h_extra),
         (padding, padding + pad_w_extra), (0, 0)),
    ).astype(jnp.bfloat16)
    # Unfold along W only (lane index j*Cin + c): the kw taps are pre-combined into the
    # contraction dim, so the kernel needs no per-tap W shift / reshape.
    x_unf = jnp.concatenate(
        [x_pad[:, :, j:j + wo_p, :] for j in range(kw)], axis=-1)     # (N, Hp2, Wo_p, kw*Cin)
    # Cut into row bands with duplicated halo rows, flatten (rows, Wo_p) -> M.
    row_idx = (jnp.arange(n_bands) * band_ho)[:, None] + jnp.arange(band_hi)[None, :]
    x_bands = x_unf[:, row_idx]                                       # (N, nb, band_hi, Wo_p, kw*Cin)
    x_bands = x_bands.reshape(n, n_bands, band_hi * wo_p, kwcin)

    # Fold BN (inference form, eps=1e-3) into the conv weights (scale) + a per-channel bias.
    inv_std = gamma.astype(jnp.float32) / jnp.sqrt(running_var.astype(jnp.float32) + eps)
    bias = beta.astype(jnp.float32) - running_mean.astype(jnp.float32) * inv_std
    # (Cout, Cin, KH, KW) -> (KH, KW, Cin, Cout) -> (KH, KW*Cin, CPAD); K index = j*Cin + c.
    w_rows = jnp.transpose(weight_oihw.astype(jnp.float32), (2, 3, 1, 0))
    w_rows = (w_rows * inv_std[None, None, None, :]).reshape(kh, kwcin, cout)
    w_rows = jnp.pad(w_rows, ((0, 0), (0, 0), (0, cpad - cout))).astype(jnp.bfloat16)
    bias_pad = jnp.pad(bias, (0, cpad - cout)).reshape(1, cpad)

    # --- derived VMEM budget (no hard-coded 32 MiB) ---
    m_rows = band_ho * wo_p
    est_bytes = (
        2 * _vmem_tile_bytes(band_hi * wo_p, kwcin, 2)      # x band, double-buffered
        + 2 * kh * _vmem_tile_bytes(kwcin, cpad, 2)         # weights (default double-buffered)
        + 2 * _vmem_tile_bytes(1, cpad, 4)                  # bias
        + 2 * _vmem_tile_bytes(m_rows, cpad, 4)             # f32 out band, double-buffered
        + _vmem_tile_bytes(m_rows, cpad, 4)                 # f32 accumulator
        + kh * _vmem_tile_bytes(m_rows, kwcin, 2)           # live matmul operand slices (upper bound)
    )
    vmem_limit = int(min(max(2 * est_bytes, 16 * 1024 * 1024), 64 * 1024 * 1024))

    kernel = functools.partial(_conv_bn_relu_kernel, kh=kh, band_ho=band_ho, wo_p=wo_p)
    out = pl.pallas_call(
        kernel,
        out_shape=jax.ShapeDtypeStruct((n, n_bands, m_rows, cpad), jnp.float32),
        grid_spec=pltpu.PrefetchScalarGridSpec(
            num_scalar_prefetch=0,
            grid=(n, n_bands),
            in_specs=[
                pl.BlockSpec((1, 1, band_hi * wo_p, kwcin), lambda b, r: (b, r, 0, 0)),
                pl.BlockSpec((kh, kwcin, cpad), lambda b, r: (0, 0, 0)),
                pl.BlockSpec((1, cpad), lambda b, r: (0, 0)),
            ],
            out_specs=pl.BlockSpec((1, 1, m_rows, cpad), lambda b, r: (b, r, 0, 0)),
        ),
        compiler_params=pltpu.CompilerParams(
            dimension_semantics=("parallel", "parallel"),
            vmem_limit_bytes=vmem_limit,
        ),
    )(x_bands, w_rows, bias_pad)

    # Strip alignment/channel padding, restore NCHW to match the PyTorch module's interface.
    out = out.reshape(n, n_bands * band_ho, wo_p, cpad)[:, :ho, :wo, :cout]
    return jnp.transpose(out, (0, 3, 1, 2))


def _reference(x_nchw, weight_oihw, gamma, beta, running_mean, running_var,
               padding=1):
    eps = 0.001
    y = jax.lax.conv_general_dilated(
        x_nchw.astype(jnp.float32), weight_oihw.astype(jnp.float32),
        window_strides=(1, 1), padding=[(padding, padding), (padding, padding)],
        dimension_numbers=("NCHW", "OIHW", "NCHW"))
    mean = running_mean.reshape(1, -1, 1, 1)
    var = running_var.reshape(1, -1, 1, 1)
    g = gamma.reshape(1, -1, 1, 1)
    b = beta.reshape(1, -1, 1, 1)
    y = (y - mean) / jnp.sqrt(var + eps) * g + b
    return jnp.maximum(y, 0.0)


if __name__ == "__main__":
    key = jax.random.PRNGKey(0)
    kx, kw_ = jax.random.split(key)

    N, Cin, H, W = 2, 4, 16, 16
    Cout, KH, KW = 8, 3, 3          # BasicConv2d(4, 8, kernel_size=3, padding=1)

    x = jax.random.normal(kx, (N, Cin, H, W), dtype=jnp.float32)
    weight = jax.random.normal(kw_, (Cout, Cin, KH, KW), dtype=jnp.float32) * 0.1

    # Deterministic BN parameters (inference / running-stats form).
    gamma = 1.0 + 0.05 * jnp.arange(Cout, dtype=jnp.float32)
    beta = 0.02 * jnp.arange(Cout, dtype=jnp.float32)
    running_mean = 0.01 * jnp.arange(Cout, dtype=jnp.float32)
    running_var = 1.0 + 0.1 * jnp.arange(Cout, dtype=jnp.float32)

    out = basic_conv2d(x, weight, gamma, beta, running_mean, running_var,
                       padding=1)
    out = jax.block_until_ready(out)

    ref = _reference(x, weight, gamma, beta, running_mean, running_var,
                     padding=1)
    assert out.shape == (N, Cout, H, W)
    # bf16 MXU inputs with f32 accumulation -> loosened tolerance vs. pure-f32 reference.
    assert jnp.allclose(out, ref, atol=2e-2, rtol=2e-2)

    print("KERNEL_OK")
</pallas_src>

<mosaic_0001>
module attributes {stable_mosaic.version = 11 : i64} {
  func.func @_conv_bn_relu_kernel(%arg0: i32, %arg1: i32, %arg2: memref<1x1x288x12xbf16, #tpu.memory_space<vmem>>, %arg3: memref<3x12x128xbf16, #tpu.memory_space<vmem>>, %arg4: memref<1x128xf32, #tpu.memory_space<vmem>>, %arg5: memref<1x1x256x128xf32, #tpu.memory_space<vmem>>) attributes {dimension_semantics = [#tpu.dimension_semantics<parallel>, #tpu.dimension_semantics<parallel>], iteration_bounds = array<i64: 2, 1>, scalar_prefetch = 0 : i64, scratch_operands = 0 : i64, tpu.core_type = #tpu.core_type<tc>, window_params = [{transform_indices = @transform_0, window_bounds = array<i64: 1, 1, 288, 12>}, {pipeline_mode = #tpu.pipeline_mode<synchronous>, transform_indices = @transform_1, window_bounds = array<i64: 3, 12, 128>}, {pipeline_mode = #tpu.pipeline_mode<synchronous>, transform_indices = @transform_2, window_bounds = array<i64: 1, 128>}, {transform_indices = @transform_3, window_bounds = array<i64: 1, 1, 256, 128>}]} {
    %cst = arith.constant 0.000000e+00 : f32
    %0 = vector.broadcast %cst : f32 to vector<256x128xf32>
    %c0 = arith.constant 0 : index
    %c0_0 = arith.constant 0 : index
    %c0_1 = arith.constant 0 : index
    %c0_2 = arith.constant 0 : index
    %1 = vector.load %arg2[%c0, %c0_0, %c0_1, %c0_2] : memref<1x1x288x12xbf16, #tpu.memory_space<vmem>>, vector<1x1x256x12xbf16>
    %2 = vector.shape_cast %1 : vector<1x1x256x12xbf16> to vector<256x12xbf16>
    %c0_3 = arith.constant 0 : index
    %c0_4 = arith.constant 0 : index
    %c0_5 = arith.constant 0 : index
    %3 = vector.load %arg3[%c0_3, %c0_4, %c0_5] : memref<3x12x128xbf16, #tpu.memory_space<vmem>>, vector<1x12x128xbf16>
    %4 = vector.shape_cast %3 : vector<1x12x128xbf16> to vector<12x128xbf16>
    %cst_6 = arith.constant dense<0.000000e+00> : vector<256x128xf32>
    %5 = tpu.matmul %2, %4, %cst_6 {dimension_numbers = #tpu.dot_dimension_numbers<[1], [0], [0], [1], [0, 0, 1, 1], [], []>} : vector<256x12xbf16>, vector<12x128xbf16>, vector<256x128xf32> -> vector<256x128xf32>
    %6 = arith.addf %0, %5 : vector<256x128xf32>
    %c0_7 = arith.constant 0 : index
    %c0_8 = arith.constant 0 : index
    %c16 = arith.constant 16 : index
    %c0_9 = arith.constant 0 : index
    %7 = vector.load %arg2[%c0_7, %c0_8, %c16, %c0_9] : memref<1x1x288x12xbf16, #tpu.memory_space<vmem>>, vector<1x1x256x12xbf16>
    %8 = vector.shape_cast %7 : vector<1x1x256x12xbf16> to vector<256x12xbf16>
    %c1 = arith.constant 1 : index
    %c0_10 = arith.constant 0 : index
    %c0_11 = arith.constant 0 : index
    %9 = vector.load %arg3[%c1, %c0_10, %c0_11] : memref<3x12x128xbf16, #tpu.memory_space<vmem>>, vector<1x12x128xbf16>
    %10 = vector.shape_cast %9 : vector<1x12x128xbf16> to vector<12x128xbf16>
    %cst_12 = arith.constant dense<0.000000e+00> : vector<256x128xf32>
    %11 = tpu.matmul %8, %10, %cst_12 {dimension_numbers = #tpu.dot_dimension_numbers<[1], [0], [0], [1], [0, 0, 1, 1], [], []>} : vector<256x12xbf16>, vector<12x128xbf16>, vector<256x128xf32> -> vector<256x128xf32>
    %12 = arith.addf %6, %11 : vector<256x128xf32>
    %c0_13 = arith.constant 0 : index
    %c0_14 = arith.constant 0 : index
    %c32 = arith.constant 32 : index
    %c0_15 = arith.constant 0 : index
    %13 = vector.load %arg2[%c0_13, %c0_14, %c32, %c0_15] : memref<1x1x288x12xbf16, #tpu.memory_space<vmem>>, vector<1x1x256x12xbf16>
    %14 = vector.shape_cast %13 : vector<1x1x256x12xbf16> to vector<256x12xbf16>
    %c2 = arith.constant 2 : index
    %c0_16 = arith.constant 0 : index
    %c0_17 = arith.constant 0 : index
    %15 = vector.load %arg3[%c2, %c0_16, %c0_17] : memref<3x12x128xbf16, #tpu.memory_space<vmem>>, vector<1x12x128xbf16>
    %16 = vector.shape_cast %15 : vector<1x12x128xbf16> to vector<12x128xbf16>
    %cst_18 = arith.constant dense<0.000000e+00> : vector<256x128xf32>
    %17 = tpu.matmul %14, %16, %cst_18 {dimension_numbers = #tpu.dot_dimension_numbers<[1], [0], [0], [1], [0, 0, 1, 1], [], []>} : vector<256x12xbf16>, vector<12x128xbf16>, vector<256x128xf32> -> vector<256x128xf32>
    %18 = arith.addf %12, %17 : vector<256x128xf32>
    %c0_19 = arith.constant 0 : index
    %c0_20 = arith.constant 0 : index
    %19 = vector.load %arg4[%c0_19, %c0_20] : memref<1x128xf32, #tpu.memory_space<vmem>>, vector<1x128xf32>
    %20 = vector.broadcast %19 : vector<1x128xf32> to vector<256x128xf32>
    %21 = arith.addf %18, %20 : vector<256x128xf32>
    %cst_21 = arith.constant 0.000000e+00 : f32
    %22 = vector.broadcast %cst_21 : f32 to vector<256x128xf32>
    %23 = arith.maximumf %21, %22 : vector<256x128xf32>
    %c0_22 = arith.constant 0 : index
    %c0_23 = arith.constant 0 : index
    %c0_24 = arith.constant 0 : index
    %c0_25 = arith.constant 0 : index
    %24 = vector.load %arg5[%c0_22, %c0_23, %c0_24, %c0_25] : memref<1x1x256x128xf32, #tpu.memory_space<vmem>>, vector<1x1x256x128xf32>
    %25 = vector.shape_cast %24 : vector<1x1x256x128xf32> to vector<256x128xf32>
    %26 = vector.shape_cast %23 : vector<256x128xf32> to vector<1x1x256x128xf32>
    tpu.vector_store %arg5[%c0_22, %c0_23, %c0_24, %c0_25], %26 {strides = array<i32>} : memref<1x1x256x128xf32, #tpu.memory_space<vmem>>, vector<1x1x256x128xf32>,
    return
  }
  func.func @transform_0(%arg0: i32, %arg1: i32) -> (i32, i32, i32, i32) {
    %c0_i32 = arith.constant 0 : i32
    %c0_i32_0 = arith.constant 0 : i32
    %c0_i32_1 = arith.constant 0 : i32
    return %arg0, %arg1, %c0_i32, %c0_i32_0 : i32, i32, i32, i32
  }
  func.func @transform_1(%arg0: i32, %arg1: i32) -> (i32, i32, i32) {
    %c0_i32 = arith.constant 0 : i32
    %c0_i32_0 = arith.constant 0 : i32
    %c0_i32_1 = arith.constant 0 : i32
    %c0_i32_2 = arith.constant 0 : i32
    return %c0_i32, %c0_i32_0, %c0_i32_1 : i32, i32, i32
  }
  func.func @transform_2(%arg0: i32, %arg1: i32) -> (i32, i32) {
    %c0_i32 = arith.constant 0 : i32
    %c0_i32_0 = arith.constant 0 : i32
    %c0_i32_1 = arith.constant 0 : i32
    return %c0_i32, %c0_i32_0 : i32, i32
  }
  func.func @transform_3(%arg0: i32, %arg1: i32) -> (i32, i32, i32, i32) {
    %c0_i32 = arith.constant 0 : i32
    %c0_i32_0 = arith.constant 0 : i32
    %c0_i32_1 = arith.constant 0 : i32
    return %arg0, %arg1, %c0_i32, %c0_i32_0 : i32, i32, i32, i32
  }
}

</mosaic_0001>

<bundles_post_ra>
// kernel: basic_conv2d.1
= control target key start
LH: loop header
LB: loop body
LE: loop exit
PB: predicated region body
PF: predicated region fallthrough
CT: control target
= control target key end

     0   :  { %s1710_s12 = smov 0   ;;  %s1712_s13 = smov 0   ;;  %s1929_s0 = inlined_call_operand.vmem [shape: bf16[2,1,288,12], index: 0, kind: input, shape index: {}]   ;;  %s1930_s1 = inlined_call_operand.vmem [shape: bf16[3,12,128], index: 1, kind: input, shape index: {}]   ;;  %s1931_s2 = inlined_call_operand.vmem [shape: f32[1,128], index: 2, kind: input, shape index: {}]   ;;  %s1932_s3 = inlined_call_operand.vmem [shape: f32[2,1,256,128], index: 3, kind: output, shape index: {}]  }
   0x1   :  { %s1714_s14 = smov 0  }
   0x2 LB: > { %s25_s15 = sadd.s32 1, %s1684_s13  ;;  %p1286_p0 = scmp.ge.s32.totalorder %s1688_s14, 1  ;;  %s1688_s14 = sphi %s1714_s14, %s13_s14   ;;  %s1684_s13 = sphi %s1712_s13, %s1934_s13   ;;  %s1680_s12 = sphi %s1710_s12, %s1933_s12  }
   0x3   : > { %p27_p1 = scmp.ge.s32.totalorder %s25_s15, 2  ;;  %p157_p2 = scmp.lt.s32.totalorder %s1688_s14, 3 }
   0x5   : > { %s1936_s15 = smov (%p27_p1, %s25_s15), 0  ;;  %p158_p3 = pnand %p1286_p0, %p157_p2 }
   0x6   : > { %v1630_v0 = vld [vmem:[%s1930_s1 + $0x8] sm:$0x3f] (!%p158_p3)   ;;  %vm381_vm0 = vcmask (!%p158_p3), 1045504   ;;  %p189_p4 = scmp.lt.s32.totalorder (!%p158_p3), %s1680_s12, 1  ;;  %v1631_v1 = vld [vmem:[%s1930_s1] sm:$0x3f] (!%p158_p3)  }
   0x7   : > { %161 = sbr.rel (%p158_p3) target bundleno = 330 (0x14a), region = 32  ;;  %1601 = vmatprep.subr.msk.bf16.mxu1 (!%p158_p3), %vm381_vm0, %v1630_v0  ;;  %v383_v2 = vsel (!%p158_p3), %vm381_vm0, %v1630_v0, 0  ;;  %v1634_v3 = vld [vmem:[%s1930_s1 + $0x10] sm:$0x3f] (!%p158_p3)   ;;  %1602 = vmatprep.subr.msk.bf16.mxu0 (!%p158_p3), %vm381_vm0, %v1631_v1  ;;  %v560_v4 = vsel (!%p158_p3), %vm381_vm0, %v1631_v1, 0  ;;  %vm332_vm1 = vcmask (!%p158_p3), 97280  }
   0x8   : > { %1434 = vmatpush3.bf16.msra.mxu1 (!%p158_p3), %v383_v2  ;;  %1468 = vmatpush3.bf16.msra.mxu0 (!%p158_p3), %v560_v4  ;;  %v892_v8 = vsel (!%p158_p3), %vm381_vm0, %v1634_v3, 0  ;;  %v1844_v56 = vld [vmem:[%s1931_s2] ss:$0 sm:$0xff] (!%p158_p3) }
   0x9   : > { %1603 = vmatprep.subr.msk.bf16.mxu1 (!%p158_p3), %vm381_vm0, %v1631_v1  ;;  %1604 = vmatprep.subr.msk.bf16.mxu0 (!%p158_p3), %vm381_vm0, %v1634_v3 }
   0xe   : > { %s1938_s12 = smov (!%p189_p4, %s1680_s12), 1 }
   0xf   : > { %s1605_s22 = smul.u32 144, %s1938_s12  ;;  %s1381_s28 = sshll.u32 %s1938_s12, 8 }
  0x10   : > { %s1851_s4 = scalar_lea.vmem %s1932_s3, %s1381_s28 }
  0x11   : > { %s1749_s25 = scalar_lea.vmem %s1929_s0, %s1605_s22 }
  0x12   : > { %v1632_v5 = vld [vmem:[%s1749_s25 + $0x8] sm:$0xff]   ;;  %v1633_v6 = vld [vmem:[%s1749_s25] sm:$0xff]   ;;  %v1635_v7 = vld [vmem:[%s1749_s25 + $0x10] sm:$0xff]  }
  0x13   : > { %1435 = vmatprep.mubr.msk.bf16.mxu1 %vm332_vm1, %v1632_v5  ;;  %1469 = vmatprep.mubr.msk.bf16.mxu0 %vm332_vm1, %v1633_v6  ;;  %v1636_v9 = vld [vmem:[%s1749_s25 + $0x18] sm:$0xff]   ;;  %v1637_v10 = vld [vmem:[%s1749_s25 + $0x20] sm:$0xff]   ;;  %v1638_v11 = vld [vmem:[%s1749_s25 + $0x28] sm:$0xff]  }
  0x14   : > { %1436 = vmatmul.mubr.msk.bf16.vlgmr.msra.gmra.mrb[0].mxu1 %vm332_vm1, %v1635_v7  ;;  %1470 = vmatmul.mubr.msk.bf16.vlgmr.msra.gmra.mrb[0].mxu0 %vm332_vm1, %v1632_v5  ;;  %v1639_v12 = vld [vmem:[%s1749_s25 + $0x30] sm:$0xff]   ;;  %v1640_v13 = vld [vmem:[%s1749_s25 + $0x38] sm:$0xff]   ;;  %v1641_v14 = vld [vmem:[%s1749_s25 + $0x40] sm:$0xff]  }
  0x15   : > { %1536 = vmatpush3.bf16.msra.mxu1 %v560_v4  ;;  %1502 = vmatpush3.bf16.msra.mxu0 %v892_v8  ;;  %v1642_v15 = vld [vmem:[%s1749_s25 + $0x48] sm:$0xff]   ;;  %v1643_v16 = vld [vmem:[%s1749_s25 + $0x10] sm:$0xff]   ;;  %v1645_v18 = vld [vmem:[%s1749_s25 + $0x18] sm:$0xff]  }
  0x16   : > { %1439 = vmatprep.mubr.msk.bf16.mxu1 %vm332_vm1, %v1636_v9  ;;  %1473 = vmatprep.mubr.msk.bf16.mxu0 %vm332_vm1, %v1635_v7  ;;  %v1644_v17 = vld [vmem:[%s1749_s25 + $0x50] sm:$0xff]   ;;  %v1646_v19 = vld [vmem:[%s1749_s25 + $0x58] sm:$0xff]   ;;  %v1647_v20 = vld [vmem:[%s1749_s25 + $0x20] sm:$0xff]  }
  0x17   : > { %v1648_v21 = vld [vmem:[%s1749_s25 + $0x60] sm:$0xff]   ;;  %v1649_v22 = vld [vmem:[%s1749_s25 + $0x28] sm:$0xff]   ;;  %v1651_v24 = vld [vmem:[%s1749_s25 + $0x30] sm:$0xff]  }
  0x18   : > { %v1650_v23 = vld [vmem:[%s1749_s25 + $0x68] sm:$0xff]   ;;  %v1652_v25 = vld [vmem:[%s1749_s25 + $0x70] sm:$0xff]   ;;  %v1653_v26 = vld [vmem:[%s1749_s25 + $0x38] sm:$0xff]  }
  0x19   : > { %v1654_v27 = vld [vmem:[%s1749_s25 + $0x78] sm:$0xff]   ;;  %v1655_v28 = vld [vmem:[%s1749_s25 + $0x40] sm:$0xff]   ;;  %v1657_v30 = vld [vmem:[%s1749_s25 + $0x48] sm:$0xff]  }
  0x1a   : > { %v1656_v29 = vld [vmem:[%s1749_s25 + $0x80] sm:$0xff]   ;;  %v1658_v31 = vld [vmem:[%s1749_s25 + $0x50] sm:$0xff]   ;;  %v1659_v32 = vld [vmem:[%s1749_s25 + $0x58] sm:$0xff]  }
  0x1b   : > { %v1660_v33 = vld [vmem:[%s1749_s25 + $0x60] sm:$0xff]   ;;  %v1661_v34 = vld [vmem:[%s1749_s25 + $0x68] sm:$0xff]   ;;  %v1662_v35 = vld [vmem:[%s1749_s25 + $0x70] sm:$0xff]  }
  0x1c   : > { %1440 = vmatmul.mubr.msk.bf16.gmra.mrb[4].mxu1 %vm332_vm1, %v1637_v10  ;;  %1474 = vmatmul.mubr.msk.bf16.gmra.mrb[4].mxu0 %vm332_vm1, %v1636_v9  ;;  %v1663_v36 = vld [vmem:[%s1749_s25 + $0x78] sm:$0xff]   ;;  %v1664_v37 = vld [vmem:[%s1749_s25 + $0x80] sm:$0xff]   ;;  %v1665_v38 = vld [vmem:[%s1749_s25 + $0x88] sm:$0xff]  }
  0x1d   : > { %1443 = vmatprep.mubr.msk.bf16.mxu1 %vm332_vm1, %v1638_v11  ;;  %1477 = vmatprep.mubr.msk.bf16.mxu0 %vm332_vm1, %v1637_v10 }
  0x24   : > { %1444 = vmatmul.mubr.msk.bf16.gmra.mrb[8].mxu1 %vm332_vm1, %v1639_v12  ;;  %1478 = vmatmul.mubr.msk.bf16.gmra.mrb[8].mxu0 %vm332_vm1, %v1638_v11 }
  0x25   : > { %1447 = vmatprep.mubr.msk.bf16.mxu1 %vm332_vm1, %v1640_v13  ;;  %1481 = vmatprep.mubr.msk.bf16.mxu0 %vm332_vm1, %v1639_v12 }
  0x2c   : > { %1448 = vmatmul.mubr.msk.bf16.gmra.mrb[12].mxu1 %vm332_vm1, %v1641_v14  ;;  %1482 = vmatmul.mubr.msk.bf16.gmra.mrb[12].mxu0 %vm332_vm1, %v1640_v13 }
  0x2d   : > { %1451 = vmatprep.mubr.msk.bf16.mxu1 %vm332_vm1, %v1642_v15  ;;  %1503 = vmatprep.mubr.msk.bf16.mxu0 %vm332_vm1, %v1643_v16 }
  0x34   : > { %1452 = vmatmul.mubr.msk.bf16.gmra.mrb[16].mxu1 %vm332_vm1, %v1644_v17  ;;  %1504 = vmatmul.mubr.msk.bf16.vlgmr.msra.gmra.mrb[0].mxu0 %vm332_vm1, %v1645_v18 }
  0x35   : > { %1455 = vmatprep.mubr.msk.bf16.mxu1 %vm332_vm1, %v1646_v19  ;;  %1507 = vmatprep.mubr.msk.bf16.mxu0 %vm332_vm1, %v1647_v20 }
  0x3c   : > { %1456 = vmatmul.mubr.msk.bf16.gmra.mrb[20].mxu1 %vm332_vm1, %v1648_v21  ;;  %1508 = vmatmul.mubr.msk.bf16.gmra.mrb[4].mxu0 %vm332_vm1, %v1649_v22 }
  0x3d   : > { %1459 = vmatprep.mubr.msk.bf16.mxu1 %vm332_vm1, %v1650_v23  ;;  %1511 = vmatprep.mubr.msk.bf16.mxu0 %vm332_vm1, %v1651_v24 }
  0x44   : > { %1460 = vmatmul.mubr.msk.bf16.gmra.mrb[24].mxu1 %vm332_vm1, %v1652_v25  ;;  %1512 = vmatmul.mubr.msk.bf16.gmra.mrb[8].mxu0 %vm332_vm1, %v1653_v26 }
  0x45   : > { %1463 = vmatprep.mubr.msk.bf16.mxu1 %vm332_vm1, %v1654_v27  ;;  %1515 = vmatprep.mubr.msk.bf16.mxu0 %vm332_vm1, %v1655_v28 }
  0x4c   : > { %1464 = vmatmul.mubr.msk.bf16.gmra.mrb[28].mxu1 %vm332_vm1, %v1656_v29  ;;  %1516 = vmatmul.mubr.msk.bf16.gmra.mrb[12].mxu0 %vm332_vm1, %v1657_v30 }
  0x4d   : > { %1485 = vmatprep.mubr.msk.bf16.mxu1 %vm332_vm1, %v1641_v14  ;;  %1519 = vmatprep.mubr.msk.bf16.mxu0 %vm332_vm1, %v1658_v31 }
  0x54   : > { %1486 = vmatmul.mubr.msk.bf16.vlgmr.msra.gmra.mrb[16].mxu1 %vm332_vm1, %v1642_v15  ;;  %1520 = vmatmul.mubr.msk.bf16.gmra.mrb[16].mxu0 %vm332_vm1, %v1659_v32 }
  0x55   : > { %1489 = vmatprep.mubr.msk.bf16.mxu1 %vm332_vm1, %v1644_v17  ;;  %1523 = vmatprep.mubr.msk.bf16.mxu0 %vm332_vm1, %v1660_v33 }
  0x5c   : > { %1490 = vmatmul.mubr.msk.bf16.gmra.mrb[20].mxu1 %vm332_vm1, %v1646_v19  ;;  %1524 = vmatmul.mubr.msk.bf16.gmra.mrb[20].mxu0 %vm332_vm1, %v1661_v34 }
  0x5d   : > { %1493 = vmatprep.mubr.msk.bf16.mxu1 %vm332_vm1, %v1648_v21  ;;  %1527 = vmatprep.mubr.msk.bf16.mxu0 %vm332_vm1, %v1662_v35 }
  0x64   : > { %1494 = vmatmul.mubr.msk.bf16.gmra.mrb[24].mxu1 %vm332_vm1, %v1650_v23  ;;  %1528 = vmatmul.mubr.msk.bf16.gmra.mrb[24].mxu0 %vm332_vm1, %v1663_v36 }
  0x65   : > { %1497 = vmatprep.mubr.msk.bf16.mxu1 %vm332_vm1, %v1652_v25  ;;  %1531 = vmatprep.mubr.msk.bf16.mxu0 %vm332_vm1, %v1664_v37 }
  0x6c   : > { %1498 = vmatmul.mubr.msk.bf16.gmra.mrb[28].mxu1 %vm332_vm1, %v1654_v27  ;;  %1532 = vmatmul.mubr.msk.bf16.gmra.mrb[28].mxu0 %vm332_vm1, %v1665_v38 }
  0xe7   : > { %v1437_v39 = vpop.f32.mrb[0].mxu1 }
  0xe8   : > { %v419_v40 = vpop.f32.mrb[1].mxu1 }
  0xe9   : > { %v1438_v41 = vpop.f32.mrb[2].mxu1 }
  0xea   : > { %v422_v42 = vpop.f32.mrb[3].mxu1 }
  0xef   : > { %v1441_v43 = vpop.f32.mrb[4].mxu1 }
  0xf0   : > { %v435_v44 = vpop.f32.mrb[5].mxu1 }
  0xf1   : > { %v1442_v45 = vpop.f32.mrb[6].mxu1 }
  0xf2   : > { %v438_v46 = vpop.f32.mrb[7].mxu1 }
  0xf7   : > { %v1445_v47 = vpop.f32.mrb[8].mxu1 }
  0xf8   : > { %v451_v48 = vpop.f32.mrb[9].mxu1 }
  0xf9   : > { %v1446_v49 = vpop.f32.mrb[10].mxu1 }
  0xfa   : > { %v454_v50 = vpop.f32.mrb[11].mxu1 }
  0xff   : > { %v1833_v51 = vpop.f32.mrb[12].mxu1 }
 0x100   : > { %v1835_v52 = vpop.f32.mrb[13].mxu1 }
 0x101   : > { %v1837_v53 = vpop.f32.mrb[14].mxu1 }
 0x102   : > { %v1839_v54 = vpop.f32.mrb[15].mxu1 }
 0x107   : > { %v1505_v55 = vpop.f32.mrb[0].mxu0 }
 0x108   : > { %v1537_v57 = vadd.f32 %v1505_v55, %v1437_v39  ;;  %v928_v58 = vpop.f32.mrb[1].mxu0 }
 0x109   : > { %v1538_v59 = vadd.f32 %v928_v58, %v419_v40  ;;  %v1506_v60 = vpop.f32.mrb[2].mxu0 }
 0x10a   : > { %v1096_v61 = vadd.f32 %v1537_v57, %v1844_v56  ;;  %v1539_v62 = vadd.f32 %v1506_v60, %v1438_v41  ;;  %v931_v63 = vpop.f32.mrb[3].mxu0 }
 0x10b   : > { %v1094_v0 = vadd.f32 %v1538_v59, %v1844_v56  ;;  %v1540_v1 = vadd.f32 %v931_v63, %v422_v42 }
 0x10c   : > { %v1128_v2 = vmax.f32 %v1096_v61, 0.0  ;;  %v1097_v3 = vadd.f32 %v1539_v62, %v1844_v56 }
 0x10d   : > { %v1126_v4 = vmax.f32 %v1094_v0, 0.0  ;;  %v1095_v5 = vadd.f32 %v1540_v1, %v1844_v56 }
 0x10e   : > { %1160 = vst [vmem:[%s1851_s4 + $0x10] sm:$0xff] %v1128_v2  ;;  %v1129_v6 = vmax.f32 %v1097_v3, 0.0 }
 0x10f   : > { %1158 = vst [vmem:[%s1851_s4] sm:$0xff] %v1126_v4  ;;  %v1127_v7 = vmax.f32 %v1095_v5, 0.0  ;;  %v1509_v8 = vpop.f32.mrb[4].mxu0 }
 0x110   : > { %1161 = vst [vmem:[%s1851_s4 + $0x18] sm:$0xff] %v1129_v6  ;;  %v1541_v9 = vadd.f32 %v1509_v8, %v1441_v43  ;;  %v944_v10 = vpop.f32.mrb[5].mxu0 }
 0x111   : > { %1159 = vst [vmem:[%s1851_s4 + $0x8] sm:$0xff] %v1127_v7  ;;  %v1542_v11 = vadd.f32 %v944_v10, %v435_v44  ;;  %v1510_v12 = vpop.f32.mrb[6].mxu0 }
 0x112   : > { %v1100_v13 = vadd.f32 %v1541_v9, %v1844_v56  ;;  %v1543_v14 = vadd.f32 %v1510_v12, %v1442_v45  ;;  %v947_v15 = vpop.f32.mrb[7].mxu0 }
 0x113   : > { %v1098_v16 = vadd.f32 %v1542_v11, %v1844_v56  ;;  %v1544_v17 = vadd.f32 %v947_v15, %v438_v46 }
 0x114   : > { %v1132_v18 = vmax.f32 %v1100_v13, 0.0  ;;  %v1101_v19 = vadd.f32 %v1543_v14, %v1844_v56 }
 0x115   : > { %v1130_v20 = vmax.f32 %v1098_v16, 0.0  ;;  %v1099_v21 = vadd.f32 %v1544_v17, %v1844_v56 }
 0x116   : > { %1164 = vst [vmem:[%s1851_s4 + $0x30] sm:$0xff] %v1132_v18  ;;  %v1133_v22 = vmax.f32 %v1101_v19, 0.0 }
 0x117   : > { %1162 = vst [vmem:[%s1851_s4 + $0x20] sm:$0xff] %v1130_v20  ;;  %v1131_v23 = vmax.f32 %v1099_v21, 0.0  ;;  %v1513_v24 = vpop.f32.mrb[8].mxu0 }
 0x118   : > { %1165 = vst [vmem:[%s1851_s4 + $0x38] sm:$0xff] %v1133_v22  ;;  %v1545_v25 = vadd.f32 %v1513_v24, %v1445_v47  ;;  %v960_v26 = vpop.f32.mrb[9].mxu0 }
 0x119   : > { %1163 = vst [vmem:[%s1851_s4 + $0x28] sm:$0xff] %v1131_v23  ;;  %v1546_v27 = vadd.f32 %v960_v26, %v451_v48  ;;  %v1514_v28 = vpop.f32.mrb[10].mxu0 }
 0x11a   : > { %v1104_v29 = vadd.f32 %v1545_v25, %v1844_v56  ;;  %v1547_v30 = vadd.f32 %v1514_v28, %v1446_v49  ;;  %v963_v31 = vpop.f32.mrb[11].mxu0 }
 0x11b   : > { %v1102_v32 = vadd.f32 %v1546_v27, %v1844_v56  ;;  %v1548_v33 = vadd.f32 %v963_v31, %v454_v50 }
 0x11c   : > { %v1136_v34 = vmax.f32 %v1104_v29, 0.0  ;;  %v1105_v35 = vadd.f32 %v1547_v30, %v1844_v56 }
 0x11d   : > { %v1134_v36 = vmax.f32 %v1102_v32, 0.0  ;;  %v1103_v37 = vadd.f32 %v1548_v33, %v1844_v56 }
 0x11e   : > { %1168 = vst [vmem:[%s1851_s4 + $0x50] sm:$0xff] %v1136_v34  ;;  %v1137_v38 = vmax.f32 %v1105_v35, 0.0 }
 0x11f   : > { %1166 = vst [vmem:[%s1851_s4 + $0x40] sm:$0xff] %v1134_v36  ;;  %v1135_v39 = vmax.f32 %v1103_v37, 0.0  ;;  %v1517_v40 = vpop.f32.mrb[12].mxu0 }
 0x120   : > { %1169 = vst [vmem:[%s1851_s4 + $0x58] sm:$0xff] %v1137_v38  ;;  %v1549_v41 = vadd.f32 %v1517_v40, %v1833_v51  ;;  %v976_v42 = vpop.f32.mrb[13].mxu0 }
 0x121   : > { %1167 = vst [vmem:[%s1851_s4 + $0x48] sm:$0xff] %v1135_v39  ;;  %v1550_v43 = vadd.f32 %v976_v42, %v1835_v52  ;;  %v1518_v44 = vpop.f32.mrb[14].mxu0 }
 0x122   : > { %v1108_v45 = vadd.f32 %v1549_v41, %v1844_v56  ;;  %v1551_v46 = vadd.f32 %v1518_v44, %v1837_v53  ;;  %v979_v47 = vpop.f32.mrb[15].mxu0 }
 0x123   : > { %v1106_v48 = vadd.f32 %v1550_v43, %v1844_v56  ;;  %v1552_v49 = vadd.f32 %v979_v47, %v1839_v54 }
 0x124   : > { %v1140_v50 = vmax.f32 %v1108_v45, 0.0  ;;  %v1109_v51 = vadd.f32 %v1551_v46, %v1844_v56 }
 0x125   : > { %v1138_v55 = vmax.f32 %v1106_v48, 0.0  ;;  %v1107_v57 = vadd.f32 %v1552_v49, %v1844_v56 }
 0x126   : > { %1172 = vst [vmem:[%s1851_s4 + $0x70] sm:$0xff] %v1140_v50  ;;  %v1141_v52 = vmax.f32 %v1109_v51, 0.0 }
 0x127   : > { %1170 = vst [vmem:[%s1851_s4 + $0x60] sm:$0xff] %v1138_v55  ;;  %v1139_v58 = vmax.f32 %v1107_v57, 0.0  ;;  %v1487_v59 = vpop.f32.mrb[16].mxu1  ;;  %v1521_v60 = vpop.f32.mrb[16].mxu0 }
 0x128   : > { %1173 = vst [vmem:[%s1851_s4 + $0x78] sm:$0xff] %v1141_v52  ;;  %v1553_v53 = vadd.f32 %v1521_v60, %v1487_v59  ;;  %v660_v61 = vpop.f32.mrb[17].mxu1  ;;  %v992_v62 = vpop.f32.mrb[17].mxu0 }
 0x129   : > { %1171 = vst [vmem:[%s1851_s4 + $0x68] sm:$0xff] %v1139_v58  ;;  %v1554_v54 = vadd.f32 %v992_v62, %v660_v61  ;;  %v1488_v63 = vpop.f32.mrb[18].mxu1  ;;  %v1522_v0 = vpop.f32.mrb[18].mxu0 }
 0x12a   : > { %v1112_v1 = vadd.f32 %v1553_v53, %v1844_v56  ;;  %v1555_v2 = vadd.f32 %v1522_v0, %v1488_v63  ;;  %v663_v3 = vpop.f32.mrb[19].mxu1  ;;  %v995_v4 = vpop.f32.mrb[19].mxu0 }
 0x12b   : > { %v1110_v5 = vadd.f32 %v1554_v54, %v1844_v56  ;;  %v1556_v6 = vadd.f32 %v995_v4, %v663_v3 }
 0x12c   : > { %v1144_v7 = vmax.f32 %v1112_v1, 0.0  ;;  %v1113_v8 = vadd.f32 %v1555_v2, %v1844_v56 }
 0x12d   : > { %v1142_v9 = vmax.f32 %v1110_v5, 0.0  ;;  %v1111_v10 = vadd.f32 %v1556_v6, %v1844_v56 }
 0x12e   : > { %1176 = vst [vmem:[%s1851_s4 + $0x90] sm:$0xff] %v1144_v7  ;;  %v1145_v11 = vmax.f32 %v1113_v8, 0.0 }
 0x12f   : > { %1174 = vst [vmem:[%s1851_s4 + $0x80] sm:$0xff] %v1142_v9  ;;  %v1143_v12 = vmax.f32 %v1111_v10, 0.0  ;;  %v1491_v13 = vpop.f32.mrb[20].mxu1  ;;  %v1525_v14 = vpop.f32.mrb[20].mxu0 }
 0x130   : > { %1177 = vst [vmem:[%s1851_s4 + $0x98] sm:$0xff] %v1145_v11  ;;  %v1557_v15 = vadd.f32 %v1525_v14, %v1491_v13  ;;  %v676_v16 = vpop.f32.mrb[21].mxu1  ;;  %v1008_v17 = vpop.f32.mrb[21].mxu0 }
 0x131   : > { %1175 = vst [vmem:[%s1851_s4 + $0x88] sm:$0xff] %v1143_v12  ;;  %v1558_v18 = vadd.f32 %v1008_v17, %v676_v16  ;;  %v1492_v19 = vpop.f32.mrb[22].mxu1  ;;  %v1526_v20 = vpop.f32.mrb[22].mxu0 }
 0x132   : > { %v1116_v21 = vadd.f32 %v1557_v15, %v1844_v56  ;;  %v1559_v22 = vadd.f32 %v1526_v20, %v1492_v19  ;;  %v679_v23 = vpop.f32.mrb[23].mxu1  ;;  %v1011_v24 = vpop.f32.mrb[23].mxu0 }
 0x133   : > { %v1114_v25 = vadd.f32 %v1558_v18, %v1844_v56  ;;  %v1560_v26 = vadd.f32 %v1011_v24, %v679_v23 }
 0x134   : > { %v1148_v27 = vmax.f32 %v1116_v21, 0.0  ;;  %v1117_v28 = vadd.f32 %v1559_v22, %v1844_v56 }
 0x135   : > { %v1146_v29 = vmax.f32 %v1114_v25, 0.0  ;;  %v1115_v30 = vadd.f32 %v1560_v26, %v1844_v56 }
 0x136   : > { %1180 = vst [vmem:[%s1851_s4 + $0xb0] sm:$0xff] %v1148_v27  ;;  %v1149_v31 = vmax.f32 %v1117_v28, 0.0 }
 0x137   : > { %1178 = vst [vmem:[%s1851_s4 + $0xa0] sm:$0xff] %v1146_v29  ;;  %v1147_v32 = vmax.f32 %v1115_v30, 0.0  ;;  %v1495_v33 = vpop.f32.mrb[24].mxu1  ;;  %v1529_v34 = vpop.f32.mrb[24].mxu0 }
 0x138   : > { %1181 = vst [vmem:[%s1851_s4 + $0xb8] sm:$0xff] %v1149_v31  ;;  %v1561_v35 = vadd.f32 %v1529_v34, %v1495_v33  ;;  %v692_v36 = vpop.f32.mrb[25].mxu1  ;;  %v1024_v37 = vpop.f32.mrb[25].mxu0 }
 0x139   : > { %1179 = vst [vmem:[%s1851_s4 + $0xa8] sm:$0xff] %v1147_v32  ;;  %v1562_v38 = vadd.f32 %v1024_v37, %v692_v36  ;;  %v1496_v39 = vpop.f32.mrb[26].mxu1  ;;  %v1530_v40 = vpop.f32.mrb[26].mxu0 }
 0x13a   : > { %v1120_v41 = vadd.f32 %v1561_v35, %v1844_v56  ;;  %v1563_v42 = vadd.f32 %v1530_v40, %v1496_v39  ;;  %v695_v43 = vpop.f32.mrb[27].mxu1  ;;  %v1027_v44 = vpop.f32.mrb[27].mxu0 }
 0x13b   : > { %v1118_v45 = vadd.f32 %v1562_v38, %v1844_v56  ;;  %v1564_v46 = vadd.f32 %v1027_v44, %v695_v43 }
 0x13c   : > { %v1152_v47 = vmax.f32 %v1120_v41, 0.0  ;;  %v1121_v48 = vadd.f32 %v1563_v42, %v1844_v56 }
 0x13d   : > { %v1150_v49 = vmax.f32 %v1118_v45, 0.0  ;;  %v1119_v50 = vadd.f32 %v1564_v46, %v1844_v56 }
 0x13e   : > { %1184 = vst [vmem:[%s1851_s4 + $0xd0] sm:$0xff] %v1152_v47  ;;  %v1153_v51 = vmax.f32 %v1121_v48, 0.0 }
 0x13f   : > { %1182 = vst [vmem:[%s1851_s4 + $0xc0] sm:$0xff] %v1150_v49  ;;  %v1151_v55 = vmax.f32 %v1119_v50, 0.0  ;;  %v1499_v57 = vpop.f32.mrb[28].mxu1  ;;  %v1533_v52 = vpop.f32.mrb[28].mxu0 }
 0x140   : > { %1185 = vst [vmem:[%s1851_s4 + $0xd8] sm:$0xff] %v1153_v51  ;;  %v1565_v58 = vadd.f32 %v1533_v52, %v1499_v57  ;;  %v708_v59 = vpop.f32.mrb[29].mxu1  ;;  %v1040_v60 = vpop.f32.mrb[29].mxu0 }
 0x141   : > { %1183 = vst [vmem:[%s1851_s4 + $0xc8] sm:$0xff] %v1151_v55  ;;  %v1566_v53 = vadd.f32 %v1040_v60, %v708_v59  ;;  %v1500_v61 = vpop.f32.mrb[30].mxu1  ;;  %v1534_v62 = vpop.f32.mrb[30].mxu0 }
 0x142   : > { %v1124_v54 = vadd.f32 %v1565_v58, %v1844_v56  ;;  %v1567_v63 = vadd.f32 %v1534_v62, %v1500_v61  ;;  %v711_v0 = vpop.f32.mrb[31].mxu1  ;;  %v1043_v1 = vpop.f32.mrb[31].mxu0 }
 0x143   : > { %v1122_v2 = vadd.f32 %v1566_v53, %v1844_v56  ;;  %v1568_v3 = vadd.f32 %v1043_v1, %v711_v0 }
 0x144   : > { %v1156_v4 = vmax.f32 %v1124_v54, 0.0  ;;  %v1125_v5 = vadd.f32 %v1567_v63, %v1844_v56 }
 0x145   : > { %v1154_v6 = vmax.f32 %v1122_v2, 0.0  ;;  %v1123_v7 = vadd.f32 %v1568_v3, %v1844_v56 }
 0x146   : > { %1188 = vst [vmem:[%s1851_s4 + $0xf0] sm:$0xff] %v1156_v4  ;;  %v1157_v8 = vmax.f32 %v1125_v5, 0.0 }
 0x147   : > { %1186 = vst [vmem:[%s1851_s4 + $0xe0] sm:$0xff] %v1154_v6  ;;  %v1155_v9 = vmax.f32 %v1123_v7, 0.0 }
 0x148   : > { %1189 = vst [vmem:[%s1851_s4 + $0xf8] sm:$0xff] %v1157_v8 }
 0x149   : > { %1187 = vst [vmem:[%s1851_s4 + $0xe8] sm:$0xff] %v1155_v9 }
 0x14a PF: > { %s13_s14 = sadd.s32 1, %s1688_s14   ;;  %s1933_s12 = smov %s1684_s13 }
 0x14b   : > { %p10_p5 = scmp.ge.s32.totalorder %s13_s14, 4   ;;  %s1934_s13 = smov %s1936_s15 }
 0x14d   :  { %12 = sbr.rel (!%p10_p5) target bundleno = 2 (0x2), region = 64 }

</bundles_post_ra>
